<compile_context>
chip_gen: v5e
topology: v5e:2x2
jax: 0.10.0
libtpu: 0.0.40
codegen_flags: <defaults>
</compile_context>

<pallas_src>
import functools
import math

import jax
import jax.numpy as jnp
from jax.experimental import pallas as pl
from jax.experimental.pallas import tpu as pltpu


def _cdiv(a, b):
    return -(-a // b)


def _round_up(a, b):
    return _cdiv(a, b) * b


_OUT_LANES = 128  # lane-dense output width (padded_output_dim <= 16 always)


def _ffmlp_kernel(x_ref, w0t_ref, wht_ref, wot_ref, o_ref, *, num_hidden_layers):
    """One batch-tile of the fully-fused MLP.

    x_ref  : (BB, input_dim)                 input dtype (cast in-kernel)
    w0t_ref: (input_dim, hidden)             bf16, W_in^T, VMEM-resident
    wht_ref: (num_layers-1, hidden, hidden)  bf16, W_hid^T per layer, resident
    wot_ref: (hidden, 128)                   bf16, W_out^T zero-padded to 128
    o_ref  : (BB, 128)                       bf16 (lane-dense store)
    """
    compute_dtype = w0t_ref.dtype

    # custom_fwd(cast_inputs=torch.half) analogue, done in-kernel (no extra
    # HBM pass); a no-op if the producer already emits bf16 activations.
    x = x_ref[...].astype(compute_dtype)

    # input layer: relu(x @ W_in^T); fp32 MXU accumulation, fp32 ReLU
    # (native on v5e's VPU), then the (required anyway) bf16 cast.
    h = jnp.dot(x, w0t_ref[...], preferred_element_type=jnp.float32)
    h = jnp.maximum(h, 0.0).astype(compute_dtype)

    # hidden layers: one whole-tile dot per layer (long M stream per weight
    # push -> fewer MXU weight loads / drain bubbles on the serial chain).
    for l in range(num_hidden_layers):
        h = jnp.dot(h, wht_ref[l], preferred_element_type=jnp.float32)
        h = jnp.maximum(h, 0.0).astype(compute_dtype)

    # output layer, no activation; N padded to 128 -> full-lane unmasked store.
    out = jnp.dot(h, wot_ref[...], preferred_element_type=jnp.float32)
    o_ref[...] = out.astype(o_ref.dtype)


def _vmem_estimate_bytes(bb, x_itemsize, input_dim, hidden_dim,
                         num_hidden_layers, out_lanes):
    """Rough per-TensorCore VMEM footprint for one pipelined batch tile."""
    # double-buffered bf16 weights (tiny)
    w = 2 * 2 * (input_dim * hidden_dim
                 + num_hidden_layers * hidden_dim * hidden_dim
                 + hidden_dim * out_lanes)
    # double-buffered input tile + double-buffered bf16 output tile
    io = 2 * bb * input_dim * x_itemsize + 2 * bb * out_lanes * 2
    # live activations: fp32 accumulator + bf16 copy, with 2x slack for temps
    act = 2 * bb * hidden_dim * (4 + 2) + bb * max(hidden_dim, out_lanes) * 4
    return w + io + act


def ffmlp_forward_pallas(x, w0t, wht, wot, *, block_b=8192):
    """x: (B, input_dim) any float dtype.  Weights pre-transposed bf16.

    Returns (grid*bb, 128) bf16; caller slices [:B, :output_dim].
    """
    B, input_dim = x.shape
    hidden_dim = w0t.shape[1]
    num_hidden_layers = wht.shape[0]
    out_lanes = wot.shape[1]
    x_itemsize = jnp.dtype(x.dtype).itemsize

    # Largest tile that fits a ~32 MiB working-set budget (leaves headroom
    # below the 40 MiB limit requested from Mosaic, itself safe on v7x's
    # 64 MiB/TC physical VMEM; v5e/v6e have 128 MiB and are never the binder).
    vmem_budget = 32 * 1024 * 1024
    bb = max(128, min(_round_up(block_b, 128), _round_up(B, 128)))
    while bb > 128 and _vmem_estimate_bytes(
            bb, x_itemsize, input_dim, hidden_dim,
            num_hidden_layers, out_lanes) > vmem_budget:
        bb = max(128, _round_up(bb // 2, 128))

    grid = _cdiv(B, bb)
    # v7x has 2 TensorCores: if the grid is odd (and >1), shrink bb slightly
    # to get an even step count so both cores stay busy under "parallel".
    # Costs one extra ~0.35 us step on single-TC v5e/v6e (negligible).
    if grid > 1 and grid % 2 == 1:
        bb2 = _round_up(_cdiv(B, grid + 1), 128)
        if bb2 >= 128 and _cdiv(B, bb2) == grid + 1:
            bb, grid = bb2, grid + 1

    b_out = grid * bb  # full output blocks; ragged tail rows sliced by caller

    kernel = functools.partial(_ffmlp_kernel, num_hidden_layers=num_hidden_layers)

    return pl.pallas_call(
        kernel,
        out_shape=jax.ShapeDtypeStruct((b_out, out_lanes), jnp.bfloat16),
        grid_spec=pltpu.PrefetchScalarGridSpec(
            num_scalar_prefetch=0,
            grid=(grid,),
            in_specs=[
                # batch tile of the inputs (ragged tail handled by Pallas'
                # partial-block machinery; garbage tail rows sliced off later)
                pl.BlockSpec((bb, input_dim), lambda i: (i, 0)),
                # weights: small, full pre-transposed matrices resident in
                # VMEM across all grid steps (constant index maps)
                pl.BlockSpec((input_dim, hidden_dim), lambda i: (0, 0)),
                pl.BlockSpec((num_hidden_layers, hidden_dim, hidden_dim),
                             lambda i: (0, 0, 0)),
                pl.BlockSpec((hidden_dim, out_lanes), lambda i: (0, 0)),
            ],
            out_specs=pl.BlockSpec((bb, out_lanes), lambda i: (i, 0)),
        ),
        compiler_params=pltpu.CompilerParams(
            dimension_semantics=("parallel",),
            # >= working-set estimate, <= v7x's 64 MiB/TC physical VMEM
            vmem_limit_bytes=40 * 1024 * 1024,
        ),
    )(x, w0t, wht, wot)


class FFMLP:
    """JAX/Pallas port of torch-ngp FFMLP (forward only, activation='relu')."""

    def __init__(self, input_dim, output_dim, hidden_dim, num_layers,
                 activation="relu", *, key=None, block_b=8192):
        assert activation == "relu"  # convert_activation('relu') == 0
        assert hidden_dim in [16, 32, 64, 128, 256]
        assert input_dim > 0 and input_dim % 16 == 0
        assert output_dim <= 16
        assert num_layers >= 2

        self.input_dim = input_dim
        self.output_dim = output_dim
        self.hidden_dim = hidden_dim
        self.num_layers = num_layers
        self.block_b = block_b
        self.padded_output_dim = int(math.ceil(output_dim / 16)) * 16
        self.num_parameters = hidden_dim * (
            input_dim + hidden_dim * (num_layers - 1) + self.padded_output_dim)

        # deterministic init: uniform(-std, std), std = sqrt(3 / hidden_dim)
        if key is None:
            key = jax.random.PRNGKey(42)
        std = math.sqrt(3.0 / hidden_dim)
        flat = jax.random.uniform(
            key, (self.num_parameters,), dtype=jnp.float32,
            minval=-std, maxval=std)

        # split flat weights (torch-ngp ordering): W_in (hidden, input),
        # (num_layers-1) x W_hid (hidden, hidden), W_out (padded_out, hidden);
        # each layer computes y = act(x @ W^T).
        n_in = hidden_dim * input_dim
        n_hid = hidden_dim * hidden_dim * (num_layers - 1)
        w0 = flat[:n_in].reshape(hidden_dim, input_dim)
        wh = flat[n_in:n_in + n_hid].reshape(num_layers - 1, hidden_dim, hidden_dim)
        wo = flat[n_in + n_hid:].reshape(self.padded_output_dim, hidden_dim)

        # Pre-transpose ONCE on the host (plain x @ W^T in the kernel, no
        # in-kernel transposes); compute in bf16 (fp16 analogue).
        self.w0t = w0.T.astype(jnp.bfloat16)                    # (input, hidden)
        self.wht = jnp.swapaxes(wh, 1, 2).astype(jnp.bfloat16)  # (L-1, hidden, hidden)
        # W_out^T zero-padded to 128 output lanes -> lane-dense kernel store.
        wot_small = wo.T.astype(jnp.bfloat16)                   # (hidden, padded_out)
        self.wot = jnp.zeros((hidden_dim, _OUT_LANES), jnp.bfloat16)
        self.wot = self.wot.at[:, :self.padded_output_dim].set(wot_small)

    def __call__(self, inputs):
        B, C = inputs.shape
        assert C == self.input_dim
        # No host-side padding copy: the kernel grid handles the ragged tail.
        out = ffmlp_forward_pallas(inputs, self.w0t, self.wht, self.wot,
                                   block_b=self.block_b)
        return out[:B, :self.output_dim]

    # pure-JAX reference for correctness checking
    def reference(self, inputs):
        x = inputs.astype(jnp.bfloat16)
        h = jnp.maximum(
            jnp.dot(x, self.w0t, preferred_element_type=jnp.float32), 0.0
        ).astype(jnp.bfloat16)
        for l in range(self.num_layers - 1):
            h = jnp.maximum(
                jnp.dot(h, self.wht[l], preferred_element_type=jnp.float32), 0.0
            ).astype(jnp.bfloat16)
        out = jnp.dot(h, self.wot, preferred_element_type=jnp.float32)
        return out.astype(jnp.bfloat16)[:, :self.output_dim]


if __name__ == "__main__":
    key = jax.random.PRNGKey(0)
    k_x, k_w, k_x2, k_w2 = jax.random.split(key, 4)

    # Test 1: small, ragged batch (single partial tile).
    input_dim, output_dim, hidden_dim, num_layers = 16, 8, 32, 3
    B = 77
    model = FFMLP(input_dim, output_dim, hidden_dim, num_layers, key=k_w)
    x = jax.random.normal(k_x, (B, input_dim), dtype=jnp.float32)

    out = jax.block_until_ready(model(x))
    assert out.shape == (B, output_dim), out.shape
    assert out.dtype == jnp.bfloat16
    ref = jax.block_until_ready(model.reference(x))
    err = jnp.max(jnp.abs(out.astype(jnp.float32) - ref.astype(jnp.float32)))
    assert float(err) < 1e-1, f"mismatch vs reference (test 1): {err}"

    # Test 2: multi-tile grid (exercises pipelining + grid-parity adjustment).
    input_dim2, output_dim2, hidden_dim2, num_layers2 = 16, 4, 64, 4
    B2 = 3000
    model2 = FFMLP(input_dim2, output_dim2, hidden_dim2, num_layers2,
                   key=k_w2, block_b=1024)
    x2 = jax.random.normal(k_x2, (B2, input_dim2), dtype=jnp.float32)

    out2 = jax.block_until_ready(model2(x2))
    assert out2.shape == (B2, output_dim2), out2.shape
    ref2 = jax.block_until_ready(model2.reference(x2))
    err2 = jnp.max(jnp.abs(out2.astype(jnp.float32) - ref2.astype(jnp.float32)))
    assert float(err2) < 1e-1, f"mismatch vs reference (test 2): {err2}"

    print("KERNEL_OK")
</pallas_src>

<mosaic_0001>
module attributes {stable_mosaic.version = 11 : i64} {
  func.func @_ffmlp_kernel(%arg0: i32, %arg1: memref<128x16xf32, #tpu.memory_space<vmem>>, %arg2: memref<16x32xbf16, #tpu.memory_space<vmem>>, %arg3: memref<2x32x32xbf16, #tpu.memory_space<vmem>>, %arg4: memref<32x128xbf16, #tpu.memory_space<vmem>>, %arg5: memref<128x128xbf16, #tpu.memory_space<vmem>>) attributes {dimension_semantics = [#tpu.dimension_semantics<parallel>], iteration_bounds = array<i64: 1>, scalar_prefetch = 0 : i64, scratch_operands = 0 : i64, tpu.core_type = #tpu.core_type<tc>, window_params = [{transform_indices = @transform_0, window_bounds = array<i64: 128, 16>}, {pipeline_mode = #tpu.pipeline_mode<synchronous>, transform_indices = @transform_1, window_bounds = array<i64: 16, 32>}, {pipeline_mode = #tpu.pipeline_mode<synchronous>, transform_indices = @transform_2, window_bounds = array<i64: 2, 32, 32>}, {pipeline_mode = #tpu.pipeline_mode<synchronous>, transform_indices = @transform_3, window_bounds = array<i64: 32, 128>}, {transform_indices = @transform_4, window_bounds = array<i64: 128, 128>}]} {
    %c0 = arith.constant 0 : index
    %c0_0 = arith.constant 0 : index
    %0 = vector.load %arg1[%c0, %c0_0] : memref<128x16xf32, #tpu.memory_space<vmem>>, vector<128x16xf32>
    %1 = arith.truncf %0 : vector<128x16xf32> to vector<128x16xbf16>
    %c0_1 = arith.constant 0 : index
    %c0_2 = arith.constant 0 : index
    %2 = vector.load %arg2[%c0_1, %c0_2] : memref<16x32xbf16, #tpu.memory_space<vmem>>, vector<16x32xbf16>
    %cst = arith.constant dense<0.000000e+00> : vector<128x32xf32>
    %3 = tpu.matmul %1, %2, %cst {dimension_numbers = #tpu.dot_dimension_numbers<[1], [0], [0], [1], [0, 0, 1, 1], [], []>} : vector<128x16xbf16>, vector<16x32xbf16>, vector<128x32xf32> -> vector<128x32xf32>
    %cst_3 = arith.constant 0.000000e+00 : f32
    %4 = vector.broadcast %cst_3 : f32 to vector<128x32xf32>
    %5 = arith.maximumf %3, %4 : vector<128x32xf32>
    %6 = arith.truncf %5 : vector<128x32xf32> to vector<128x32xbf16>
    %c0_4 = arith.constant 0 : index
    %c0_5 = arith.constant 0 : index
    %c0_6 = arith.constant 0 : index
    %7 = vector.load %arg3[%c0_4, %c0_5, %c0_6] : memref<2x32x32xbf16, #tpu.memory_space<vmem>>, vector<1x32x32xbf16>
    %8 = vector.shape_cast %7 : vector<1x32x32xbf16> to vector<32x32xbf16>
    %cst_7 = arith.constant dense<0.000000e+00> : vector<128x32xf32>
    %9 = tpu.matmul %6, %8, %cst_7 {dimension_numbers = #tpu.dot_dimension_numbers<[1], [0], [0], [1], [0, 0, 1, 1], [], []>} : vector<128x32xbf16>, vector<32x32xbf16>, vector<128x32xf32> -> vector<128x32xf32>
    %cst_8 = arith.constant 0.000000e+00 : f32
    %10 = vector.broadcast %cst_8 : f32 to vector<128x32xf32>
    %11 = arith.maximumf %9, %10 : vector<128x32xf32>
    %12 = arith.truncf %11 : vector<128x32xf32> to vector<128x32xbf16>
    %c1 = arith.constant 1 : index
    %c0_9 = arith.constant 0 : index
    %c0_10 = arith.constant 0 : index
    %13 = vector.load %arg3[%c1, %c0_9, %c0_10] : memref<2x32x32xbf16, #tpu.memory_space<vmem>>, vector<1x32x32xbf16>
    %14 = vector.shape_cast %13 : vector<1x32x32xbf16> to vector<32x32xbf16>
    %cst_11 = arith.constant dense<0.000000e+00> : vector<128x32xf32>
    %15 = tpu.matmul %12, %14, %cst_11 {dimension_numbers = #tpu.dot_dimension_numbers<[1], [0], [0], [1], [0, 0, 1, 1], [], []>} : vector<128x32xbf16>, vector<32x32xbf16>, vector<128x32xf32> -> vector<128x32xf32>
    %cst_12 = arith.constant 0.000000e+00 : f32
    %16 = vector.broadcast %cst_12 : f32 to vector<128x32xf32>
    %17 = arith.maximumf %15, %16 : vector<128x32xf32>
    %18 = arith.truncf %17 : vector<128x32xf32> to vector<128x32xbf16>
    %c0_13 = arith.constant 0 : index
    %c0_14 = arith.constant 0 : index
    %19 = vector.load %arg4[%c0_13, %c0_14] : memref<32x128xbf16, #tpu.memory_space<vmem>>, vector<32x128xbf16>
    %cst_15 = arith.constant dense<0.000000e+00> : vector<128x128xf32>
    %20 = tpu.matmul %18, %19, %cst_15 {dimension_numbers = #tpu.dot_dimension_numbers<[1], [0], [0], [1], [0, 0, 1, 1], [], []>} : vector<128x32xbf16>, vector<32x128xbf16>, vector<128x128xf32> -> vector<128x128xf32>
    %21 = arith.truncf %20 : vector<128x128xf32> to vector<128x128xbf16>
    %c0_16 = arith.constant 0 : index
    %c0_17 = arith.constant 0 : index
    %22 = vector.load %arg5[%c0_16, %c0_17] : memref<128x128xbf16, #tpu.memory_space<vmem>>, vector<128x128xbf16>
    tpu.vector_store %arg5[%c0_16, %c0_17], %21 {strides = array<i32>} : memref<128x128xbf16, #tpu.memory_space<vmem>>, vector<128x128xbf16>,
    return
  }
  func.func @transform_0(%arg0: i32) -> (i32, i32) {
    %c0_i32 = arith.constant 0 : i32
    %c0_i32_0 = arith.constant 0 : i32
    return %arg0, %c0_i32 : i32, i32
  }
  func.func @transform_1(%arg0: i32) -> (i32, i32) {
    %c0_i32 = arith.constant 0 : i32
    %c0_i32_0 = arith.constant 0 : i32
    %c0_i32_1 = arith.constant 0 : i32
    return %c0_i32, %c0_i32_0 : i32, i32
  }
  func.func @transform_2(%arg0: i32) -> (i32, i32, i32) {
    %c0_i32 = arith.constant 0 : i32
    %c0_i32_0 = arith.constant 0 : i32
    %c0_i32_1 = arith.constant 0 : i32
    %c0_i32_2 = arith.constant 0 : i32
    return %c0_i32, %c0_i32_0, %c0_i32_1 : i32, i32, i32
  }
  func.func @transform_3(%arg0: i32) -> (i32, i32) {
    %c0_i32 = arith.constant 0 : i32
    %c0_i32_0 = arith.constant 0 : i32
    %c0_i32_1 = arith.constant 0 : i32
    return %c0_i32, %c0_i32_0 : i32, i32
  }
  func.func @transform_4(%arg0: i32) -> (i32, i32) {
    %c0_i32 = arith.constant 0 : i32
    %c0_i32_0 = arith.constant 0 : i32
    return %arg0, %c0_i32 : i32, i32
  }
}

</mosaic_0001>

<bundles_post_ra>
// kernel: tpu_custom_call.1
= control target key start
LH: loop header
LB: loop body
LE: loop exit
PB: predicated region body
PF: predicated region fallthrough
CT: control target
= control target key end

     0   :  { %vm51_vm0 = vcmask 130048   ;;  %s795_s0 = inlined_call_operand.vmem [shape: f32[77,16], index: 0, kind: input, shape index: {}]   ;;  %s796_s1 = inlined_call_operand.vmem [shape: bf16[16,32], index: 1, kind: input, shape index: {}]   ;;  %s797_s2 = inlined_call_operand.vmem [shape: bf16[2,32,32], index: 2, kind: input, shape index: {}]   ;;  %s798_s3 = inlined_call_operand.vmem [shape: bf16[32,128], index: 3, kind: input, shape index: {}]   ;;  %s799_s4 = inlined_call_operand.hbm [shape: bf16[128,128], index: 4, kind: output, shape index: {}]  }
   0x1   :  { %v580_v0 = vld [vmem:[%s796_s1] sm:$0xff]  ;;  %v20_v2 = vld [vmem:[%s795_s0 + $0x8] sm:$0xff] }
   0x2   :  { %v19_v1 = vld [vmem:[%s795_s0] sm:$0xff]  ;;  %83 = vmatpush.bf16.msra.mxu0 %v580_v0 }
   0x3   :  { %v35_v3 = vpack.c.bf16 %v20_v2, %v19_v1 }
   0x4   :  { %9 = vsyncpa [#allocation3], 0  ;;  %v21_v4 = vld [vmem:[%s795_s0 + $0x10] sm:$0xff]  ;;  %v22_v5 = vld [vmem:[%s795_s0 + $0x18] sm:$0xff]  ;;  %vm165_vm1 = vcmask 261120   ;;  %s504_s8 = sshll.u32 %s799_s4, 4  ;;  %s505_s8 = int_to_ptr.hbm [resolvable:$true] %s504_s8 }
   0x5   :  { %520 = vmatmul.msk.bf16.vlgmr.msra.gmra.mxu0 %vm51_vm0, %v35_v3  ;;  %v36_v6 = vpack.c.bf16 %v22_v5, %v21_v4  ;;  %v23_v7 = vld [vmem:[%s795_s0 + $0x20] sm:$0xff]  ;;  %v24_v8 = vld [vmem:[%s795_s0 + $0x28] sm:$0xff]  ;;  %v25_v10 = vld [vmem:[%s795_s0 + $0x30] sm:$0xff]  ;;  %s664_s9 = smov 64   ;;  %s665_s10 = smov 4  }
   0x6   :  { %v37_v9 = vpack.c.bf16 %v24_v8, %v23_v7  ;;  %v26_v11 = vld [vmem:[%s795_s0 + $0x38] sm:$0xff]  ;;  %v27_v13 = vld [vmem:[%s795_s0 + $0x40] sm:$0xff]  ;;  %v28_v14 = vld [vmem:[%s795_s0 + $0x48] sm:$0xff] }
   0x7   :  { %v38_v12 = vpack.c.bf16 %v26_v11, %v25_v10  ;;  %v39_v15 = vpack.c.bf16 %v28_v14, %v27_v13  ;;  %v29_v16 = vld [vmem:[%s795_s0 + $0x50] sm:$0xff]  ;;  %v30_v17 = vld [vmem:[%s795_s0 + $0x58] sm:$0xff]  ;;  %v31_v19 = vld [vmem:[%s795_s0 + $0x60] sm:$0xff] }
   0x8   :  { %v40_v18 = vpack.c.bf16 %v30_v17, %v29_v16  ;;  %v32_v20 = vld [vmem:[%s795_s0 + $0x68] sm:$0xff]  ;;  %v581_v23 = vld [vmem:[%s797_s2] sm:$0xff]  ;;  %v33_v24 = vld [vmem:[%s795_s0 + $0x70] sm:$0xff] }
   0x9   :  { %v41_v21 = vpack.c.bf16 %v32_v20, %v31_v19  ;;  %v582_v22 = vld [vmem:[%s797_s2 + $0x8] sm:$0xff]  ;;  %v34_v25 = vld [vmem:[%s795_s0 + $0x78] sm:$0xff]  ;;  %v583_v0 = vld [vmem:[%s797_s2 + $0x10] sm:$0xff] }
   0xa   :  { %196 = vmatpush.bf16.msra.mxu1 %v582_v22  ;;  %v42_v26 = vpack.c.bf16 %v34_v25, %v33_v24  ;;  %v584_v62 = vld [vmem:[%s797_s2 + $0x18] sm:$0xff] }
   0xb   :  { %310 = vmatpush.bf16.msra.mxu2 %v584_v62 }
   0xe   :  { %197 = vmatpush.bf16.msra.mxu1 %v581_v23 }
   0xf   :  { %311 = vmatpush.bf16.msra.mxu2 %v583_v0 }
  0x15   :  { %521 = vmatmul.msk.bf16.gmra.mxu0 %vm51_vm0, %v36_v6 }
  0x25   :  { %522 = vmatmul.msk.bf16.gmra.mxu0 %vm51_vm0, %v37_v9 }
  0x35   :  { %523 = vmatmul.msk.bf16.gmra.mxu0 %vm51_vm0, %v38_v12 }
  0x45   :  { %524 = vmatmul.msk.bf16.gmra.mxu0 %vm51_vm0, %v39_v15 }
  0x55   :  { %525 = vmatmul.msk.bf16.gmra.mxu0 %vm51_vm0, %v40_v18 }
  0x65   :  { %526 = vmatmul.msk.bf16.gmra.mxu0 %vm51_vm0, %v41_v21 }
  0x75   :  { %527 = vmatmul.msk.bf16.gmra.mxu0 %vm51_vm0, %v42_v26 }
  0x82   :  { %v85_v27 = vpop.f32.mrf.mxu0 }
  0x83   :  { %v125_v29 = vmax.f32 %v85_v27, 0.0 }
  0x8a   :  { %v87_v28 = vpop.f32.mrf.mxu0 }
  0x8b   :  { %v126_v30 = vmax.f32 %v87_v28, 0.0 }
  0x8d   :  { %v141_v31 = vpack.c.bf16 %v126_v30, %v125_v29 }
  0x8f   :  { %536 = vmatmul.msk.bf16.vlgmr.msra.gmra.mxu1 %vm165_vm1, %v141_v31 }
  0x92   :  { %v90_v32 = vpop.f32.mrf.mxu0 }
  0x93   :  { %v127_v34 = vmax.f32 %v90_v32, 0.0 }
  0x9a   :  { %v92_v33 = vpop.f32.mrf.mxu0 }
  0x9b   :  { %v128_v35 = vmax.f32 %v92_v33, 0.0 }
  0x9d   :  { %v142_v36 = vpack.c.bf16 %v128_v35, %v127_v34 }
  0x9f   :  { %537 = vmatmul.msk.bf16.gmra.mxu1 %vm165_vm1, %v142_v36 }
  0xa2   :  { %v95_v37 = vpop.f32.mrf.mxu0 }
  0xa3   :  { %v129_v39 = vmax.f32 %v95_v37, 0.0 }
  0xaa   :  { %v97_v38 = vpop.f32.mrf.mxu0 }
  0xab   :  { %v130_v40 = vmax.f32 %v97_v38, 0.0 }
  0xad   :  { %v143_v41 = vpack.c.bf16 %v130_v40, %v129_v39 }
  0xaf   :  { %538 = vmatmul.msk.bf16.gmra.mxu1 %vm165_vm1, %v143_v41  ;;  %v586_v41 = vld [vmem:[%s798_s3 + $0x8] sm:$0xff] }
  0xb0   :  { %423 = vmatpush.bf16.msra.mxu3 %v586_v41 }
  0xb2   :  { %v100_v42 = vpop.f32.mrf.mxu0 }
  0xb3   :  { %v131_v44 = vmax.f32 %v100_v42, 0.0 }
  0xba   :  { %v102_v43 = vpop.f32.mrf.mxu0 }
  0xbb   :  { %v132_v45 = vmax.f32 %v102_v43, 0.0  ;;  %v585_v43 = vld [vmem:[%s798_s3] sm:$0xff]  ;;  %s663_s3 = smov [#allocation2]  }
  0xbc   :  { %424 = vmatpush.bf16.msra.mxu3 %v585_v43  ;;  %s502_s5 = sshll.u32 %s663_s3, 4  ;;  %s503_s5 = int_to_ptr.vmem [resolvable:$true] %s502_s5 }
  0xbd   :  { %v144_v46 = vpack.c.bf16 %v132_v45, %v131_v44 }
  0xbf   :  { %539 = vmatmul.msk.bf16.gmra.mxu1 %vm165_vm1, %v144_v46 }
  0xc2   :  { %v105_v47 = vpop.f32.mrf.mxu0 }
  0xc3   :  { %v133_v49 = vmax.f32 %v105_v47, 0.0 }
  0xca   :  { %v107_v48 = vpop.f32.mrf.mxu0 }
  0xcb   :  { %v134_v50 = vmax.f32 %v107_v48, 0.0 }
  0xcd   :  { %v145_v51 = vpack.c.bf16 %v134_v50, %v133_v49 }
  0xcf   :  { %540 = vmatmul.msk.bf16.gmra.mxu1 %vm165_vm1, %v145_v51 }
  0xd2   :  { %v110_v52 = vpop.f32.mrf.mxu0 }
  0xd3   :  { %v135_v54 = vmax.f32 %v110_v52, 0.0 }
  0xda   :  { %v112_v53 = vpop.f32.mrf.mxu0 }
  0xdb   :  { %v136_v55 = vmax.f32 %v112_v53, 0.0 }
  0xdd   :  { %v146_v56 = vpack.c.bf16 %v136_v55, %v135_v54 }
  0xdf   :  { %541 = vmatmul.msk.bf16.gmra.mxu1 %vm165_vm1, %v146_v56 }
  0xe2   :  { %v115_v57 = vpop.f32.mrf.mxu0 }
  0xe3   :  { %v137_v59 = vmax.f32 %v115_v57, 0.0 }
  0xea   :  { %v117_v58 = vpop.f32.mrf.mxu0 }
  0xeb   :  { %v138_v60 = vmax.f32 %v117_v58, 0.0 }
  0xed   :  { %v147_v61 = vpack.c.bf16 %v138_v60, %v137_v59 }
  0xef   :  { %542 = vmatmul.msk.bf16.gmra.mxu1 %vm165_vm1, %v147_v61 }
  0xf2   :  { %v120_v63 = vpop.f32.mrf.mxu0 }
  0xf3   :  { %v139_v2 = vmax.f32 %v120_v63, 0.0 }
  0xfa   :  { %v122_v1 = vpop.f32.mrf.mxu0 }
  0xfb   :  { %v140_v3 = vmax.f32 %v122_v1, 0.0 }
  0xfd   :  { %v148_v4 = vpack.c.bf16 %v140_v3, %v139_v2 }
  0xff   :  { %543 = vmatmul.msk.bf16.gmra.mxu1 %vm165_vm1, %v148_v4 }
 0x10c   :  { %v199_v5 = vpop.f32.mrf.mxu1 }
 0x10d   :  { %v239_v7 = vmax.f32 %v199_v5, 0.0 }
 0x114   :  { %v201_v6 = vpop.f32.mrf.mxu1 }
 0x115   :  { %v240_v8 = vmax.f32 %v201_v6, 0.0 }
 0x117   :  { %v255_v9 = vpack.c.bf16 %v240_v8, %v239_v7 }
 0x119   :  { %556 = vmatmul.msk.bf16.vlgmr.msra.gmra.mxu2 %vm165_vm1, %v255_v9 }
 0x11c   :  { %v204_v10 = vpop.f32.mrf.mxu1 }
 0x11d   :  { %v241_v12 = vmax.f32 %v204_v10, 0.0 }
 0x124   :  { %v206_v11 = vpop.f32.mrf.mxu1 }
 0x125   :  { %v242_v13 = vmax.f32 %v206_v11, 0.0 }
 0x127   :  { %v256_v14 = vpack.c.bf16 %v242_v13, %v241_v12 }
 0x129   :  { %557 = vmatmul.msk.bf16.gmra.mxu2 %vm165_vm1, %v256_v14 }
 0x12c   :  { %v209_v15 = vpop.f32.mrf.mxu1 }
 0x12d   :  { %v243_v17 = vmax.f32 %v209_v15, 0.0 }
 0x134   :  { %v211_v16 = vpop.f32.mrf.mxu1 }
 0x135   :  { %v244_v18 = vmax.f32 %v211_v16, 0.0 }
 0x137   :  { %v257_v19 = vpack.c.bf16 %v244_v18, %v243_v17 }
 0x139   :  { %558 = vmatmul.msk.bf16.gmra.mxu2 %vm165_vm1, %v257_v19 }
 0x13c   :  { %v214_v20 = vpop.f32.mrf.mxu1 }
 0x13d   :  { %v245_v22 = vmax.f32 %v214_v20, 0.0 }
 0x144   :  { %v216_v21 = vpop.f32.mrf.mxu1 }
 0x145   :  { %v246_v23 = vmax.f32 %v216_v21, 0.0 }
 0x147   :  { %v258_v24 = vpack.c.bf16 %v246_v23, %v245_v22 }
 0x149   :  { %559 = vmatmul.msk.bf16.gmra.mxu2 %vm165_vm1, %v258_v24 }
 0x14c   :  { %v219_v25 = vpop.f32.mrf.mxu1 }
 0x14d   :  { %v247_v27 = vmax.f32 %v219_v25, 0.0 }
 0x154   :  { %v221_v26 = vpop.f32.mrf.mxu1 }
 0x155   :  { %v248_v28 = vmax.f32 %v221_v26, 0.0 }
 0x157   :  { %v259_v29 = vpack.c.bf16 %v248_v28, %v247_v27 }
 0x159   :  { %560 = vmatmul.msk.bf16.gmra.mxu2 %vm165_vm1, %v259_v29 }
 0x15c   :  { %v224_v30 = vpop.f32.mrf.mxu1 }
 0x15d   :  { %v249_v32 = vmax.f32 %v224_v30, 0.0 }
 0x164   :  { %v226_v31 = vpop.f32.mrf.mxu1 }
 0x165   :  { %v250_v33 = vmax.f32 %v226_v31, 0.0 }
 0x167   :  { %v260_v34 = vpack.c.bf16 %v250_v33, %v249_v32 }
 0x169   :  { %561 = vmatmul.msk.bf16.gmra.mxu2 %vm165_vm1, %v260_v34 }
 0x16c   :  { %v229_v35 = vpop.f32.mrf.mxu1 }
 0x16d   :  { %v251_v37 = vmax.f32 %v229_v35, 0.0 }
 0x174   :  { %v231_v36 = vpop.f32.mrf.mxu1 }
 0x175   :  { %v252_v38 = vmax.f32 %v231_v36, 0.0 }
 0x177   :  { %v261_v39 = vpack.c.bf16 %v252_v38, %v251_v37 }
 0x179   :  { %562 = vmatmul.msk.bf16.gmra.mxu2 %vm165_vm1, %v261_v39 }
 0x17c   :  { %v234_v40 = vpop.f32.mrf.mxu1 }
 0x17d   :  { %v253_v44 = vmax.f32 %v234_v40, 0.0 }
 0x184   :  { %v236_v42 = vpop.f32.mrf.mxu1 }
 0x185   :  { %v254_v45 = vmax.f32 %v236_v42, 0.0 }
 0x187   :  { %v262_v46 = vpack.c.bf16 %v254_v45, %v253_v44 }
 0x189   :  { %563 = vmatmul.msk.bf16.gmra.mxu2 %vm165_vm1, %v262_v46 }
 0x19c   :  { %v313_v47 = vpop.f32.mrf.mxu2 }
 0x19d   :  { %v353_v49 = vmax.f32 %v313_v47, 0.0 }
 0x1a4   :  { %v315_v48 = vpop.f32.mrf.mxu2 }
 0x1a5   :  { %v354_v50 = vmax.f32 %v315_v48, 0.0 }
 0x1a7   :  { %v369_v51 = vpack.c.bf16 %v354_v50, %v353_v49 }
 0x1a9   :  { %572 = vmatmul.msk.bf16.vlgmr.msra.gmra.mxu3 %vm165_vm1, %v369_v51 }
 0x1ac   :  { %v318_v52 = vpop.f32.mrf.mxu2 }
 0x1ad   :  { %v355_v54 = vmax.f32 %v318_v52, 0.0 }
 0x1b4   :  { %v320_v53 = vpop.f32.mrf.mxu2 }
 0x1b5   :  { %v356_v55 = vmax.f32 %v320_v53, 0.0 }
 0x1b7   :  { %v370_v56 = vpack.c.bf16 %v356_v55, %v355_v54 }
 0x1b9   :  { %573 = vmatmul.msk.bf16.gmra.mxu3 %vm165_vm1, %v370_v56 }
 0x1bc   :  { %v323_v57 = vpop.f32.mrf.mxu2 }
 0x1bd   :  { %v357_v59 = vmax.f32 %v323_v57, 0.0 }
 0x1c4   :  { %v325_v58 = vpop.f32.mrf.mxu2 }
 0x1c5   :  { %v358_v60 = vmax.f32 %v325_v58, 0.0 }
 0x1c7   :  { %v371_v61 = vpack.c.bf16 %v358_v60, %v357_v59 }
 0x1c9   :  { %574 = vmatmul.msk.bf16.gmra.mxu3 %vm165_vm1, %v371_v61 }
 0x1cc   :  { %v328_v62 = vpop.f32.mrf.mxu2 }
 0x1cd   :  { %v359_v0 = vmax.f32 %v328_v62, 0.0 }
 0x1d4   :  { %v330_v63 = vpop.f32.mrf.mxu2 }
 0x1d5   :  { %v360_v1 = vmax.f32 %v330_v63, 0.0 }
 0x1d7   :  { %v372_v2 = vpack.c.bf16 %v360_v1, %v359_v0 }
 0x1d9   :  { %575 = vmatmul.msk.bf16.gmra.mxu3 %vm165_vm1, %v372_v2 }
 0x1dc   :  { %v333_v3 = vpop.f32.mrf.mxu2 }
 0x1dd   :  { %v361_v5 = vmax.f32 %v333_v3, 0.0 }
 0x1e4   :  { %v335_v4 = vpop.f32.mrf.mxu2 }
 0x1e5   :  { %v362_v6 = vmax.f32 %v335_v4, 0.0 }
 0x1e7   :  { %v373_v7 = vpack.c.bf16 %v362_v6, %v361_v5 }
 0x1e9   :  { %576 = vmatmul.msk.bf16.gmra.mxu3 %vm165_vm1, %v373_v7 }
 0x1ec   :  { %v338_v8 = vpop.f32.mrf.mxu2 }
 0x1ed   :  { %v363_v10 = vmax.f32 %v338_v8, 0.0 }
 0x1f4   :  { %v340_v9 = vpop.f32.mrf.mxu2 }
 0x1f5   :  { %v364_v11 = vmax.f32 %v340_v9, 0.0 }
 0x1f7   :  { %v374_v12 = vpack.c.bf16 %v364_v11, %v363_v10 }
 0x1f9   :  { %577 = vmatmul.msk.bf16.gmra.mxu3 %vm165_vm1, %v374_v12 }
 0x1fc   :  { %v343_v13 = vpop.f32.mrf.mxu2 }
 0x1fd   :  { %v365_v15 = vmax.f32 %v343_v13, 0.0 }
 0x204   :  { %v345_v14 = vpop.f32.mrf.mxu2 }
 0x205   :  { %v366_v16 = vmax.f32 %v345_v14, 0.0 }
 0x207   :  { %v375_v17 = vpack.c.bf16 %v366_v16, %v365_v15 }
 0x209   :  { %578 = vmatmul.msk.bf16.gmra.mxu3 %vm165_vm1, %v375_v17 }
 0x20c   :  { %v348_v18 = vpop.f32.mrf.mxu2 }
 0x20d   :  { %v367_v20 = vmax.f32 %v348_v18, 0.0 }
 0x214   :  { %v350_v19 = vpop.f32.mrf.mxu2 }
 0x215   :  { %v368_v21 = vmax.f32 %v350_v19, 0.0 }
 0x217   :  { %v376_v22 = vpack.c.bf16 %v368_v21, %v367_v20 }
 0x219   :  { %579 = vmatmul.msk.bf16.gmra.mxu3 %vm165_vm1, %v376_v22 }
 0x22c   :  { %v426_v23 = vpop.f32.mrf.mxu3 }
 0x234   :  { %v428_v24 = vpop.f32.mrf.mxu3 }
 0x235   :  { %v590_v25 = vpack.c.bf16 %v428_v24, %v426_v23 }
 0x237   :  { %591 = vst [vmem:[#allocation2] sm:$0xff] %v590_v25  }
 0x23c   :  { %v431_v26 = vpop.f32.mrf.mxu3 }
 0x244   :  { %v433_v27 = vpop.f32.mrf.mxu3 }
 0x245   :  { %v595_v28 = vpack.c.bf16 %v433_v27, %v431_v26 }
 0x247   :  { %627 = vst [vmem:[#allocation2 + $0x8] sm:$0xff] %v595_v28  }
 0x24c   :  { %v436_v29 = vpop.f32.mrf.mxu3 }
 0x254   :  { %v438_v30 = vpop.f32.mrf.mxu3 }
 0x255   :  { %v600_v31 = vpack.c.bf16 %v438_v30, %v436_v29 }
 0x257   :  { %628 = vst [vmem:[#allocation2 + $0x10] sm:$0xff] %v600_v31  }
 0x25c   :  { %v441_v32 = vpop.f32.mrf.mxu3 }
 0x264   :  { %v443_v33 = vpop.f32.mrf.mxu3 }
 0x265   :  { %v605_v34 = vpack.c.bf16 %v443_v33, %v441_v32 }
 0x267   :  { %629 = vst [vmem:[#allocation2 + $0x18] sm:$0xff] %v605_v34  }
 0x26c   :  { %v446_v35 = vpop.f32.mrf.mxu3 }
 0x274   :  { %v448_v36 = vpop.f32.mrf.mxu3 }
 0x275   :  { %v610_v37 = vpack.c.bf16 %v448_v36, %v446_v35 }
 0x277   :  { %630 = vst [vmem:[#allocation2 + $0x20] sm:$0xff] %v610_v37  }
 0x27c   :  { %v451_v38 = vpop.f32.mrf.mxu3 }
 0x284   :  { %v453_v39 = vpop.f32.mrf.mxu3 }
 0x285   :  { %v615_v40 = vpack.c.bf16 %v453_v39, %v451_v38 }
 0x287   :  { %631 = vst [vmem:[#allocation2 + $0x28] sm:$0xff] %v615_v40  }
 0x28c   :  { %v456_v41 = vpop.f32.mrf.mxu3 }
 0x294   :  { %v458_v42 = vpop.f32.mrf.mxu3 }
 0x295   :  { %v620_v43 = vpack.c.bf16 %v458_v42, %v456_v41 }
 0x297   :  { %632 = vst [vmem:[#allocation2 + $0x30] sm:$0xff] %v620_v43  }
 0x29c   :  { %v461_v44 = vpop.f32.mrf.mxu3 }
 0x2a4   :  { %v463_v45 = vpop.f32.mrf.mxu3 }
 0x2a5   :  { %v625_v46 = vpack.c.bf16 %v463_v45, %v461_v44 }
 0x2a7   :  { %633 = vst [vmem:[#allocation2 + $0x38] sm:$0xff] %v625_v46  }
 0x2a8   :  { %510 = dma.vmem_to_hbm [thread:$0]  %s503_s5, 1024, %s505_s8, [#allocation3], %s664_s9, %s664_s9, %s665_s10  }
 0x2a9   :  { %661 = dma.done.wait [#allocation3], 1024  }
 0x2aa   :  { %662 = vsyncadd [#allocation3], 4294966272 }
 0x2ab   :  { %515 = vsyncpa [#allocation3], 1 }

</bundles_post_ra>
